<compile_context>
chip_gen: v6e
topology: v6e:2x2x1
jax: 0.10.0
libtpu: 0.0.40
codegen_flags: <defaults>
</compile_context>

<pallas_src>
import functools

import jax
import jax.numpy as jnp
import numpy as np
from jax import lax
from jax.experimental import pallas as pl
from jax.experimental.pallas import tpu as pltpu


def _round_up(x, m):
    return ((x + m - 1) // m) * m


def _cdiv(a, b):
    return (a + b - 1) // b


def _focal_ce_kernel(logits_ref, targets_ref, out_ref, *,
                     n_total, block_n, blocks_per_partial):
    """Accumulates sum over valid rows of (logsumexp(logits) - logits[target])."""
    pp = pl.program_id(0)          # partial-sum index ("parallel" axis)
    ii = pl.program_id(1)          # reduction step within this partial

    @pl.when(ii == 0)
    def _():
        out_ref[...] = jnp.zeros_like(out_ref)

    logits = logits_ref[...]                                    # (BN, C) native
    bn, c = logits.shape
    lf32 = logits.astype(jnp.float32)                           # f32 math
    # TODO(synk): bf16 exp/sub on v6e/v7x (bf16-native EUP/VPU) with f32 accum.

    # Numerically stable per-row log-sum-exp.
    m = jnp.max(lf32, axis=-1, keepdims=True)                            # (BN,1)
    se = jnp.sum(jnp.exp(lf32 - m), axis=-1, keepdims=True)              # (BN,1)
    lse = m + jnp.log(se)                                                # (BN,1)

    # Mask rows past the true (unpadded) batch size, fold to a (1,1) partial.
    row_start = (pp * blocks_per_partial + ii) * block_n
    row_ids = lax.broadcasted_iota(jnp.int32, (bn, 1), 0) + row_start
    lse_sum = jnp.sum(jnp.where(row_ids < n_total, lse, 0.0),
                      axis=0, keepdims=True)                             # (1,1)

    # Sum of target logits over the tile, using lane-dense targets (1, BN):
    # one-hot built in (C, BN) orientation (no sublane relayout), contracted
    # on the MXU; trace((C,BN)@(BN,C)) == sum_r logits[r, t_r].  Padded rows
    # contribute exactly 0 because padded logits rows are zero-filled.
    t = targets_ref[...]                                                 # (1,BN)
    class_ids = lax.broadcasted_iota(jnp.int32, (c, bn), 0)              # (C,BN)
    onehot_t = (class_ids == t).astype(logits.dtype)                     # (C,BN)
    prod = jnp.dot(onehot_t, logits,
                   preferred_element_type=jnp.float32)                   # (C,C)
    ri = lax.broadcasted_iota(jnp.int32, (c, c), 0)
    ci = lax.broadcasted_iota(jnp.int32, (c, c), 1)
    tgt_sum = jnp.sum(jnp.sum(jnp.where(ri == ci, prod, 0.0),
                              axis=1, keepdims=True),
                      axis=0, keepdims=True)                             # (1,1)

    # Accumulate this tile's CE sum into this partial's resident output tile.
    out_ref[...] = out_ref[...] + (lse_sum - tgt_sum)


def focal_loss(logits, targets, gamma=2.0, block_n=None, num_partials=2):
    """Pallas implementation of FocalLoss.forward(inputs, targets)."""
    n, c = logits.shape
    itemsize = jnp.dtype(logits.dtype).itemsize

    # VMEM capacity: used both for tile sizing and the scoped limit.
    try:
        vmem_cap = int(pltpu.get_tpu_info().vmem_capacity_bytes)
    except Exception:
        vmem_cap = 64 * 1024 * 1024          # v7x-safe fallback
    vmem_budget = (vmem_cap * 3) // 4        # headroom for Mosaic internals

    # --- tile sizing: ~4 MiB lane-aligned tiles (multiple of 128 rows) -------
    if block_n is None:
        tile_budget = 4 * 1024 * 1024
        block_n = tile_budget // max(1, c * itemsize)
    block_n = int(block_n)
    block_n = min(block_n, 32768)
    block_n = min(block_n, _round_up(n, 128))
    block_n = max(128, (block_n // 128) * 128)   # aligned for f32/bf16/int8 packing

    def _vmem_estimate(bn):
        in_tile = bn * c * itemsize          # streamed logits tile
        f32_tile = bn * c * 4                # f32 working copies (exp, one-hot, ...)
        tgt_tile = 8 * bn * 4                # (1, BN) int32 block, 8-sublane padded
        return 2 * (in_tile + tgt_tile) + 5 * f32_tile + (4 << 20)

    while _vmem_estimate(block_n) > vmem_budget and block_n > 128:
        block_n = max(128, ((block_n // 2) // 128) * 128)
    # TODO(synk): very large class counts would also need C-dim tiling.

    num_blocks = _cdiv(n, block_n)
    n_part = max(1, min(int(num_partials), num_blocks))   # 2 -> one per v7x core
    num_blocks = _round_up(num_blocks, n_part)
    bpp = num_blocks // n_part
    n_pad = num_blocks * block_n

    if n_pad != n:
        logits = jnp.pad(logits, ((0, n_pad - n), (0, 0)))   # zero-filled rows
        targets = jnp.pad(targets, ((0, n_pad - n),))
    targets_2d = targets.astype(jnp.int32).reshape(1, n_pad)  # lane-dense layout

    vmem_bytes = int(min(max(_vmem_estimate(block_n), 4 << 20), vmem_budget))

    out = pl.pallas_call(
        functools.partial(_focal_ce_kernel, n_total=n, block_n=block_n,
                          blocks_per_partial=bpp),
        out_shape=jax.ShapeDtypeStruct((n_part * 8, 128), jnp.float32),
        grid=(n_part, bpp),
        in_specs=[
            pl.BlockSpec((block_n, c), lambda pp, ii: (pp * bpp + ii, 0)),
            pl.BlockSpec((1, block_n), lambda pp, ii: (0, pp * bpp + ii)),
        ],
        out_specs=pl.BlockSpec((8, 128), lambda pp, ii: (pp, 0)),
        compiler_params=pltpu.CompilerParams(
            dimension_semantics=("parallel", "arbitrary"),
            vmem_limit_bytes=vmem_bytes,
        ),
    )(logits, targets_2d)

    # Finalize (scalar work) in plain JAX: mean CE, then the focal transform.
    partial_sums = out.reshape(n_part, 8, 128)[:, 0, 0]
    ce = jnp.sum(partial_sums) / jnp.float32(n)
    pt = jnp.exp(-ce)
    x = 1.0 - pt
    if float(gamma) >= 0 and float(gamma) == int(gamma):
        scale = lax.integer_pow(x, int(gamma))   # exact multiply chain
    else:
        scale = x ** gamma                        # non-integer gamma only
    # TODO(synk): per-class `weight` (module arg, default None) not implemented.
    return scale * ce


def _focal_loss_ref(logits, targets, gamma=2.0):
    # Pure-JAX reference mirroring the torch module's semantics.
    logp = jax.nn.log_softmax(logits.astype(jnp.float32), axis=-1)
    ce = -jnp.mean(jnp.take_along_axis(logp, targets[:, None], axis=-1))
    pt = jnp.exp(-ce)
    return (1.0 - pt) ** gamma * ce


if __name__ == "__main__":
    key = jax.random.PRNGKey(0)
    k1, k2, k3, k4 = jax.random.split(key, 4)

    # Case 1: small f32 batch, single tile.
    N, C = 8, 32
    logits = jax.random.normal(k1, (N, C), dtype=jnp.float32)
    targets = jax.random.randint(k2, (N,), 0, C, dtype=jnp.int32)
    out = jax.block_until_ready(focal_loss(logits, targets, gamma=2.0))
    ref = _focal_loss_ref(logits, targets, gamma=2.0)
    assert np.allclose(np.asarray(out), np.asarray(ref), rtol=1e-4, atol=1e-5), (
        out, ref)

    # Case 2: N not a tile multiple, forced small BLOCK_N -> multi-step
    # accumulation on both partial-sum tiles + padded-row masking path.
    N2, C2 = 300, 32
    logits2 = jax.random.normal(k3, (N2, C2), dtype=jnp.float32)
    targets2 = jax.random.randint(k4, (N2,), 0, C2, dtype=jnp.int32)
    out2 = jax.block_until_ready(focal_loss(logits2, targets2, gamma=2.0,
                                            block_n=128))
    ref2 = _focal_loss_ref(logits2, targets2, gamma=2.0)
    assert np.allclose(np.asarray(out2), np.asarray(ref2), rtol=1e-4,
                       atol=1e-5), (out2, ref2)

    # Case 3: bf16 logits streamed in native dtype (f32 math in-kernel).
    logits_bf16 = logits.astype(jnp.bfloat16)
    out3 = jax.block_until_ready(focal_loss(logits_bf16, targets, gamma=2.0))
    ref3 = _focal_loss_ref(logits_bf16, targets, gamma=2.0)
    assert np.allclose(np.asarray(out3), np.asarray(ref3), rtol=1e-4,
                       atol=1e-5), (out3, ref3)

    print("KERNEL_OK")
</pallas_src>

<mosaic_0001>
module attributes {stable_mosaic.version = 11 : i64} {
  func.func @_focal_ce_kernel(%arg0: i32, %arg1: i32, %arg2: memref<128x32xf32, #tpu.memory_space<vmem>>, %arg3: memref<1x128xi32, #tpu.memory_space<vmem>>, %arg4: memref<8x128xf32, #tpu.memory_space<vmem>>) attributes {dimension_semantics = [#tpu.dimension_semantics<parallel>, #tpu.dimension_semantics<arbitrary>], iteration_bounds = array<i64: 1, 1>, scalar_prefetch = 0 : i64, scratch_operands = 0 : i64, tpu.core_type = #tpu.core_type<tc>, window_params = [{transform_indices = @transform_0, window_bounds = array<i64: 128, 32>}, {transform_indices = @transform_1, window_bounds = array<i64: 1, 128>}, {transform_indices = @transform_2, window_bounds = array<i64: 8, 128>}]} {
    %c0_i32 = arith.constant 0 : i32
    %0 = arith.cmpi eq, %arg1, %c0_i32 : i32
    %1 = arith.extui %0 : i1 to i32
    %c0_i32_0 = arith.constant 0 : i32
    %2 = arith.cmpi ne, %1, %c0_i32_0 : i32
    scf.if %2 {
      %cst_15 = arith.constant 0.000000e+00 : f32
      %46 = vector.broadcast %cst_15 : f32 to vector<8x128xf32>
      %c0_16 = arith.constant 0 : index
      %c0_17 = arith.constant 0 : index
      %47 = vector.load %arg4[%c0_16, %c0_17] : memref<8x128xf32, #tpu.memory_space<vmem>>, vector<8x128xf32>
      tpu.vector_store %arg4[%c0_16, %c0_17], %46 {strides = array<i32>} : memref<8x128xf32, #tpu.memory_space<vmem>>, vector<8x128xf32>,
    } else {
    }
    %c0 = arith.constant 0 : index
    %c0_1 = arith.constant 0 : index
    %3 = vector.load %arg2[%c0, %c0_1] : memref<128x32xf32, #tpu.memory_space<vmem>>, vector<128x32xf32>
    %cst = arith.constant dense<0xFF800000> : vector<128xf32>
    %4 = vector.multi_reduction <maximumf>, %3, %cst [1] : vector<128x32xf32> to vector<128xf32>
    %5 = vector.shape_cast %4 : vector<128xf32> to vector<128x1xf32>
    %6 = vector.broadcast %5 : vector<128x1xf32> to vector<128x32xf32>
    %7 = arith.subf %3, %6 : vector<128x32xf32>
    %8 = math.exp %7 : vector<128x32xf32>
    %cst_2 = arith.constant dense<0.000000e+00> : vector<128xf32>
    %9 = vector.multi_reduction <add>, %8, %cst_2 [1] : vector<128x32xf32> to vector<128xf32>
    %10 = vector.shape_cast %9 : vector<128xf32> to vector<128x1xf32>
    %11 = math.log %10 : vector<128x1xf32>
    %12 = arith.addf %5, %11 : vector<128x1xf32>
    %c1_i32 = arith.constant 1 : i32
    %13 = arith.muli %arg0, %c1_i32 : i32
    %14 = arith.addi %13, %arg1 : i32
    %c128_i32 = arith.constant 128 : i32
    %15 = arith.muli %14, %c128_i32 : i32
    %16 = tpu.iota {dimensions = array<i32: 0>} : vector<128x1xi32>
    %17 = vector.broadcast %15 : i32 to vector<128x1xi32>
    %18 = arith.addi %16, %17 : vector<128x1xi32>
    %c8_i32 = arith.constant 8 : i32
    %19 = vector.broadcast %c8_i32 : i32 to vector<128x1xi32>
    %20 = arith.cmpi slt, %18, %19 : vector<128x1xi32>
    %cst_3 = arith.constant 0.000000e+00 : f32
    %21 = vector.broadcast %cst_3 : f32 to vector<128x1xf32>
    %22 = arith.select %20, %12, %21 : vector<128x1xi1>, vector<128x1xf32>
    %cst_4 = arith.constant dense<0.000000e+00> : vector<1xf32>
    %23 = vector.multi_reduction <add>, %22, %cst_4 [0] : vector<128x1xf32> to vector<1xf32>
    %24 = vector.shape_cast %23 : vector<1xf32> to vector<1x1xf32>
    %c0_5 = arith.constant 0 : index
    %c0_6 = arith.constant 0 : index
    %25 = vector.load %arg3[%c0_5, %c0_6] : memref<1x128xi32, #tpu.memory_space<vmem>>, vector<1x128xi32>
    %26 = tpu.iota {dimensions = array<i32: 0>} : vector<32x128xi32>
    %27 = vector.broadcast %25 : vector<1x128xi32> to vector<32x128xi32>
    %28 = arith.cmpi eq, %26, %27 : vector<32x128xi32>
    %29 = arith.extui %28 : vector<32x128xi1> to vector<32x128xi32>
    %30 = arith.sitofp %29 : vector<32x128xi32> to vector<32x128xf32>
    %cst_7 = arith.constant dense<0.000000e+00> : vector<32x32xf32>
    %31 = tpu.matmul %30, %3, %cst_7 {dimension_numbers = #tpu.dot_dimension_numbers<[1], [0], [0], [1], [0, 0, 1, 1], [], []>} : vector<32x128xf32>, vector<128x32xf32>, vector<32x32xf32> -> vector<32x32xf32>
    %32 = tpu.iota {dimensions = array<i32: 0>} : vector<32x32xi32>
    %33 = tpu.iota {dimensions = array<i32: 1>} : vector<32x32xi32>
    %34 = arith.cmpi eq, %32, %33 : vector<32x32xi32>
    %cst_8 = arith.constant 0.000000e+00 : f32
    %35 = vector.broadcast %cst_8 : f32 to vector<32x32xf32>
    %36 = arith.select %34, %31, %35 : vector<32x32xi1>, vector<32x32xf32>
    %cst_9 = arith.constant dense<0.000000e+00> : vector<32xf32>
    %37 = vector.multi_reduction <add>, %36, %cst_9 [1] : vector<32x32xf32> to vector<32xf32>
    %38 = vector.shape_cast %37 : vector<32xf32> to vector<32x1xf32>
    %cst_10 = arith.constant dense<0.000000e+00> : vector<1xf32>
    %39 = vector.multi_reduction <add>, %38, %cst_10 [0] : vector<32x1xf32> to vector<1xf32>
    %40 = vector.shape_cast %39 : vector<1xf32> to vector<1x1xf32>
    %c0_11 = arith.constant 0 : index
    %c0_12 = arith.constant 0 : index
    %41 = vector.load %arg4[%c0_11, %c0_12] : memref<8x128xf32, #tpu.memory_space<vmem>>, vector<8x128xf32>
    %42 = arith.subf %24, %40 : vector<1x1xf32>
    %43 = vector.broadcast %42 : vector<1x1xf32> to vector<8x128xf32>
    %44 = arith.addf %41, %43 : vector<8x128xf32>
    %c0_13 = arith.constant 0 : index
    %c0_14 = arith.constant 0 : index
    %45 = vector.load %arg4[%c0_13, %c0_14] : memref<8x128xf32, #tpu.memory_space<vmem>>, vector<8x128xf32>
    tpu.vector_store %arg4[%c0_13, %c0_14], %44 {strides = array<i32>} : memref<8x128xf32, #tpu.memory_space<vmem>>, vector<8x128xf32>,
    return
  }
  func.func @transform_0(%arg0: i32, %arg1: i32) -> (i32, i32) {
    %c1_i32 = arith.constant 1 : i32
    %0 = arith.muli %arg0, %c1_i32 : i32
    %1 = arith.addi %0, %arg1 : i32
    %c0_i32 = arith.constant 0 : i32
    %c0_i32_0 = arith.constant 0 : i32
    return %1, %c0_i32 : i32, i32
  }
  func.func @transform_1(%arg0: i32, %arg1: i32) -> (i32, i32) {
    %c1_i32 = arith.constant 1 : i32
    %0 = arith.muli %arg0, %c1_i32 : i32
    %1 = arith.addi %0, %arg1 : i32
    %c0_i32 = arith.constant 0 : i32
    %c0_i32_0 = arith.constant 0 : i32
    return %c0_i32, %1 : i32, i32
  }
  func.func @transform_2(%arg0: i32, %arg1: i32) -> (i32, i32) {
    %c0_i32 = arith.constant 0 : i32
    %c0_i32_0 = arith.constant 0 : i32
    return %arg0, %c0_i32 : i32, i32
  }
}

</mosaic_0001>

<bundles_post_ra>
// kernel: tpu_custom_call.1
= control target key start
LH: loop header
LB: loop body
LE: loop exit
PB: predicated region body
PF: predicated region fallthrough
CT: control target
= control target key end

     0   :  { %vm69_vm0 = vcmask 261120   ;;  %s724_s0 = inlined_call_operand.vmem [shape: f32[128,32], index: 0, kind: input, shape index: {}]   ;;  %s725_s1 = inlined_call_operand.vmem [shape: s32[1,128], index: 1, kind: input, shape index: {}]   ;;  %s726_s2 = inlined_call_operand.hbm [shape: f32[8,128], index: 2, kind: output, shape index: {}]  }
   0x1   :  { %v68_v0 = vld [vmem:[%s724_s0 + $0x78] sm:$0xff]  ;;  %v662_v1 = vld [vmem:[%s724_s0] sm:$0xff]  ;;  %v67_v2 = vld [vmem:[%s724_s0 + $0x70] sm:$0xff] }
   0x2   :  { %540 = vmatprep.subr.mxu0 %v68_v0  ;;  %v70_v3 = vsel %vm69_vm0, %v662_v1, -inf  ;;  %578 = vmatprep.subr.mxu1 %v68_v0  ;;  %v66_v4 = vld [vmem:[%s724_s0 + $0x68] sm:$0xff]  ;;  %v65_v5 = vld [vmem:[%s724_s0 + $0x60] sm:$0xff] }
   0x3   :  { %541 = vmatpush3.msra.mxu0 %v68_v0  ;;  %71 = vmax.xlane.f32.xlu0 %v70_v3 }
   0x4   :  { %542 = vmatprep.subr.mxu0 %v67_v2  ;;  %594 = vmatpush3.msra.mxu1 %v68_v0 }
   0x5   :  { %543 = vmatpush3.msra.mxu0 %v67_v2  ;;  %579 = vmatprep.subr.mxu1 %v67_v2 }
   0x6   :  { %544 = vmatprep.subr.mxu0 %v66_v4  ;;  %595 = vmatpush3.msra.mxu1 %v67_v2 }
   0x7   :  { %7 = vsyncpa [#allocation3], 0  ;;  %545 = vmatpush3.msra.mxu0 %v66_v4  ;;  %580 = vmatprep.subr.mxu1 %v66_v4  ;;  %v64_v6 = vld [vmem:[%s724_s0 + $0x58] sm:$0xff]  ;;  %v63_v7 = vld [vmem:[%s724_s0 + $0x50] sm:$0xff]  ;;  %v264_v13 = vlaneseq  ;;  %v639_v23 = vmov 1.0  }
   0x8   :  { %546 = vmatprep.subr.mxu0 %v65_v5  ;;  %596 = vmatpush3.msra.mxu1 %v66_v4  ;;  %v62_v8 = vld [vmem:[%s724_s0 + $0x48] sm:$0xff]  ;;  %v61_v9 = vld [vmem:[%s724_s0 + $0x40] sm:$0xff]  ;;  %v60_v10 = vld [vmem:[%s724_s0 + $0x38] sm:$0xff] }
   0x9   :  { %547 = vmatpush3.msra.mxu0 %v65_v5  ;;  %581 = vmatprep.subr.mxu1 %v65_v5  ;;  %v59_v11 = vld [vmem:[%s724_s0 + $0x30] sm:$0xff]  ;;  %v58_v12 = vld [vmem:[%s724_s0 + $0x28] sm:$0xff]  ;;  %v57_v14 = vld [vmem:[%s724_s0 + $0x20] sm:$0xff]  ;;  %v265_v16 = vshrl.u32 %v264_v13, 7  ;;  %v454_v29 = vand.u32 127, %v264_v13 }
   0xa   :  { %548 = vmatprep.subr.mxu0 %v64_v6  ;;  %597 = vmatpush3.msra.mxu1 %v65_v5  ;;  %v56_v15 = vld [vmem:[%s724_s0 + $0x18] sm:$0xff]  ;;  %v55_v17 = vld [vmem:[%s724_s0 + $0x10] sm:$0xff]  ;;  %v54_v18 = vld [vmem:[%s724_s0 + $0x8] sm:$0xff]  ;;  %s640_s0 = smov [#allocation2]  }
   0xb   :  { %549 = vmatpush3.msra.mxu0 %v64_v6  ;;  %582 = vmatprep.subr.mxu1 %v64_v6  ;;  %v511_v19 = vld [vmem:[%s725_s1] ss:$0 sm:$0xff]  ;;  %v266_v20 = vadd.s32 8, %v265_v16  ;;  %v267_v21 = vadd.s32 16, %v265_v16  ;;  %v268_v22 = vadd.s32 24, %v265_v16  ;;  %vm455_vm6 = vcmp.eq.s32.totalorder %v265_v16, %v454_v29  ;;  %s494_s1 = sshll.u32 %s640_s0, 4  ;;  %s495_s1 = int_to_ptr.vmem [resolvable:$true] %s494_s1 }
   0xc   :  { %550 = vmatprep.subr.mxu0 %v63_v7  ;;  %598 = vmatpush3.msra.mxu1 %v64_v6  ;;  %vm356_vm1 = vcmp.eq.s32.totalorder %v265_v16, %v511_v19  ;;  %s617_s15 = scalar_lea.vmem %s495_s1, 128  ;;  %p622_p1 = scmp.lt.s32.totalorder %s495_s1, %s495_s1 }
   0xd   :  { %551 = vmatpush3.msra.mxu0 %v63_v7  ;;  %583 = vmatprep.subr.mxu1 %v63_v7  ;;  %vm357_vm2 = vcmp.eq.s32.totalorder %v266_v20, %v511_v19  ;;  %vm358_vm3 = vcmp.eq.s32.totalorder %v267_v21, %v511_v19  ;;  %vm359_vm4 = vcmp.eq.s32.totalorder %v268_v22, %v511_v19  ;;  %p618_p0 = scmp.ne.s32.totalorder %s495_s1, %s617_s15  ;;  %p623_p2 = scmp.lt.s32.totalorder %s617_s15, %s617_s15 }
   0xe   :  { %552 = vmatprep.subr.mxu0 %v62_v8  ;;  %599 = vmatpush3.msra.mxu1 %v63_v7  ;;  %vm456_vm5 = vcmp.eq.s32.totalorder %v266_v20, %v454_v29  ;;  %vm457_vm7 = vcmp.eq.s32.totalorder %v267_v21, %v454_v29  ;;  %vm458_vm8 = vcmp.eq.s32.totalorder %v268_v22, %v454_v29 }
   0xf   :  { %553 = vmatpush3.msra.mxu0 %v62_v8  ;;  %584 = vmatprep.subr.mxu1 %v62_v8  ;;  %p624_p3 = por %p623_p2, %p622_p1 }
  0x10   :  { %554 = vmatprep.subr.mxu0 %v61_v9  ;;  %600 = vmatpush3.msra.mxu1 %v62_v8 }
  0x11   :  { %555 = vmatpush3.msra.mxu0 %v61_v9  ;;  %585 = vmatprep.subr.mxu1 %v61_v9  ;;  %p625_p4 = pnand %p624_p3, %p618_p0 }
  0x12   :  { %556 = vmatprep.subr.mxu0 %v60_v10  ;;  %601 = vmatpush3.msra.mxu1 %v61_v9 }
  0x13   :  { %557 = vmatpush3.msra.mxu0 %v60_v10  ;;  %586 = vmatprep.subr.mxu1 %v60_v10 }
  0x14   :  { %558 = vmatprep.subr.mxu0 %v59_v11  ;;  %602 = vmatpush3.msra.mxu1 %v60_v10 }
  0x15   :  { %559 = vmatpush3.msra.mxu0 %v59_v11  ;;  %587 = vmatprep.subr.mxu1 %v59_v11 }
  0x16   :  { %560 = vmatprep.subr.mxu0 %v58_v12  ;;  %603 = vmatpush3.msra.mxu1 %v59_v11 }
  0x17   :  { %561 = vmatpush3.msra.mxu0 %v58_v12  ;;  %588 = vmatprep.subr.mxu1 %v58_v12 }
  0x18   :  { %562 = vmatprep.subr.mxu0 %v57_v14  ;;  %604 = vmatpush3.msra.mxu1 %v58_v12 }
  0x19   :  { %563 = vmatpush3.msra.mxu0 %v57_v14  ;;  %589 = vmatprep.subr.mxu1 %v57_v14 }
  0x1a   :  { %564 = vmatprep.subr.mxu0 %v56_v15  ;;  %605 = vmatpush3.msra.mxu1 %v57_v14 }
  0x1b   :  { %565 = vmatpush3.msra.mxu0 %v56_v15  ;;  %590 = vmatprep.subr.mxu1 %v56_v15 }
  0x1c   :  { %566 = vmatprep.subr.mxu0 %v55_v17  ;;  %606 = vmatpush3.msra.mxu1 %v56_v15 }
  0x1d   :  { %567 = vmatpush3.msra.mxu0 %v55_v17  ;;  %591 = vmatprep.subr.mxu1 %v55_v17 }
  0x1e   :  { %568 = vmatprep.subr.mxu0 %v54_v18  ;;  %607 = vmatpush3.msra.mxu1 %v55_v17 }
  0x1f   :  { %569 = vmatpush3.msra.mxu0 %v54_v18  ;;  %592 = vmatprep.subr.mxu1 %v54_v18 }
  0x20   :  { %570 = vmatprep.subr.mxu0 %v662_v1  ;;  %608 = vmatpush3.msra.mxu1 %v54_v18 }
  0x21   :  { %571 = vmatpush3.msra.mxu0 %v662_v1  ;;  %572 = vmatprep.mubr.msk.f32.mxu0 %vm356_vm1, %v639_v23 }
  0x22   :  { %593 = vmatprep.subr.mxu1 %v662_v1  ;;  %573 = vmatmul.mubr.msk.f32.vlgmr.msra.gmra.mxu0 %vm357_vm2, %v639_v23 }
  0x23   :  { %609 = vmatpush3.msra.mxu1 %v662_v1  ;;  %575 = vmatprep.mubr.msk.f32.mxu1 %vm358_vm3, %v639_v23 }
  0x24   :  { %576 = vmatmul.mubr.msk.f32.vlgmr.msra.gmra.mxu1 %vm359_vm4, %v639_v23 }
  0x8c   :  { %v72_v24 = vpop.xlane.xlu0 %71 }
  0x8d   :  { %v118_v25 = vsub.f32 %v662_v1, %v72_v24 }
  0x8f   :  { %v134_v26 = vmul.f32 1.442695, %v118_v25 }
  0x91   :  { %613 = vpow2.f32 %v134_v26 }
  0x9e   :  { %v614_v27 = vpop.eup %613 }
  0x9f   :  { %v166_v28 = vsel %vm69_vm0, %v614_v27, 0.0 }
  0xa0   :  { %167 = vadd.xlane.f32.xlu0 %v166_v28 }
  0xe2   :  { %v574_v30 = vpop.f32.mrf.mxu0 }
  0xe3   :  { %v460_v31 = vsel %vm456_vm5, %v574_v30, 0.0 }
  0xe4   :  { %v434_v32 = vpop.f32.mrf.mxu0  ;;  %v577_v33 = vpop.f32.mrf.mxu1  ;;  %v466_v34 = vsel %vm69_vm0, %v460_v31, 0.0 }
  0xe5   :  { %v459_v35 = vsel %vm455_vm6, %v434_v32, 0.0  ;;  %467 = vadd.xlane.f32.xlu1 %v466_v34  ;;  %v462_v40 = vsel %vm458_vm8, %v577_v33, 0.0 }
  0xe6   :  { %v444_v36 = vpop.f32.mrf.mxu1  ;;  %v463_v38 = vsel %vm69_vm0, %v459_v35, 0.0  ;;  %v472_v41 = vsel %vm69_vm0, %v462_v40, 0.0 }
  0xe7   :  { %v461_v37 = vsel %vm457_vm7, %v444_v36, 0.0 }
  0xe8   :  { %v469_v39 = vsel %vm69_vm0, %v461_v37, 0.0 }
  0xe9   :  { %464 = vadd.xlane.f32.xlu1 %v463_v38  ;;  %470 = vadd.xlane.f32.xlu0 %v469_v39 }
  0xed   :  { %473 = vadd.xlane.f32.xlu1 %v472_v41 }
 0x129   :  { %v168_v42 = vpop.xlane.xlu0 %167 }
 0x12a   :  { %615 = vlog2.f32 %v168_v42 }
 0x137   :  { %v616_v43 = vpop.eup %615 }
 0x138   :  { %v215_v44 = vmul.f32 0.6931472, %v616_v43 }
 0x13a   :  { %v246_v45 = vadd.f32 %v215_v44, %v72_v24 }
 0x13c   :  { %v345_v47 = vrot.slane %v246_v45, 4 }
 0x13e   :  { %v346_v49 = vadd.f32 %v345_v47, %v246_v45 }
 0x140   :  { %v347_v54 = vrot.slane %v346_v49, 2 }
 0x142   :  { %v348_v57 = vadd.f32 %v347_v54, %v346_v49 }
 0x144   :  { %v349_v61 = vrot.slane %v348_v57, 1 }
 0x146   :  { %v350_v0 = vadd.f32 %v349_v61, %v348_v57 }
 0x16e   :  { %v468_v46 = vpop.xlane.xlu1 %467 }
 0x172   :  { %v465_v48 = vpop.xlane.xlu1 %464  ;;  %v471_v51 = vpop.xlane.xlu0 %470 }
 0x173   :  { %v475_v50 = vadd.f32 %v468_v46, %v465_v48 }
 0x175   :  { %v476_v52 = vadd.f32 %v475_v50, %v471_v51 }
 0x176   :  { %v474_v53 = vpop.xlane.xlu1 %473 }
 0x177   :  { %v477_v55 = vadd.f32 %v476_v52, %v474_v53 }
 0x179   :  { %v478_v56 = vrot.slane %v477_v55, 4 }
 0x17b   :  { %v479_v58 = vadd.f32 %v478_v56, %v477_v55 }
 0x17d   :  { %v480_v59 = vrot.slane %v479_v58, 2 }
 0x17f   :  { %v481_v60 = vadd.f32 %v480_v59, %v479_v58 }
 0x181   :  { %v482_v62 = vrot.slane %v481_v60, 1 }
 0x183   :  { %v483_v63 = vadd.f32 %v482_v62, %v481_v60 }
 0x185   :  { %v485_v1 = vsub.f32 %v350_v0, %v483_v63 }
 0x187   :  { %487 = vst [vmem:[#allocation2] sm:$0xff] %v485_v1 }
 0x188   :  { %628 = shalt.err (!%p625_p4)
}
 0x189   :  { %497 = dma.vmem_to_hbm [thread:$0]  %s495_s1, 128, %s726_s2, [#allocation3]  }
 0x18a   :  { %637 = dma.done.wait [#allocation3], 128  }
 0x18b   :  { %638 = vsyncadd [#allocation3], 4294967168 }
 0x18c   :  { %501 = vsyncpa [#allocation3], 1 }

</bundles_post_ra>
